<compile_context>
chip_gen: v7x
topology: tpu7x:2x2x1
jax: 0.10.0
libtpu: 0.0.40
codegen_flags: <defaults>
</compile_context>

<pallas_src>
import functools

import jax
import jax.numpy as jnp
from jax.experimental import pallas as pl
from jax.experimental.pallas import tpu as pltpu


def mlp_kernel(x_ref, w1_ref, w2_ref, b2_ref, o_ref):
    # x : (TB, D) activation tile in natural (batch, feature) layout (streamed)
    # w1: (H, D)  first-layer weight, PyTorch (out, in) layout (VMEM-resident)
    # w2: (H, 1)  second-layer weight column (VMEM-resident)
    # b2: (1, 1)  second-layer bias scalar (SMEM)
    # o : (1, TB) lane-dense output slab (batch on the lane axis)
    #
    # Contract w1 dim 1 with x dim 1 on the MXU -> (H, TB); the layout change
    # (batch onto lanes) happens inside the matmul, not as a wrapper transpose.
    h = jax.lax.dot_general(
        w1_ref[...], x_ref[...],
        dimension_numbers=(((1,), (1,)), ((), ())),
        preferred_element_type=jnp.float32)                 # (H, TB) on MXU
    h = jnp.maximum(h, 0.0)                                 # ReLU (VPU)
    z = jnp.sum(h * w2_ref[...], axis=0, keepdims=True)     # VPU mul + XLU reduce
    z = z + b2_ref[0, 0]                                    # scalar bias from SMEM
    # Sigmoid: exp on the (idle) EUP; exact reciprocal keeps full accuracy.
    o_ref[...] = 1.0 / (1.0 + jnp.exp(-z))


def _auto_tb(batch):
    """Batch tile heuristic: ~16 grid steps so v7x megacore still pipelines,
    clamped to [512, 8192] (large DMAs, trivial VMEM), lane-width aligned."""
    target = -(-batch // 16)                    # ceil(B / 16)
    tb = max(512, min(8192, target))
    tb = -(-tb // 128) * 128                    # round up to lane width
    tb = min(tb, -(-batch // 128) * 128)        # never exceed rounded-up batch
    return max(tb, 128)


@functools.partial(jax.jit, static_argnames=("tb",))
def mlp_forward(x, w1, w2, b2, *, tb=None):
    """Forward pass of the PyTorch MLP.

    x : (B, D) f32 activations (natural layout; no wrapper transpose/pad).
    w1: (H, D) f32  -- PyTorch linear_1.weight layout (out, in), H = D // 2.
    w2: (1, H) f32  -- PyTorch linear_2.weight layout.
    b2: (1,)   f32  -- PyTorch linear_2.bias.
    Returns torch.squeeze-equivalent output: (B,) for B > 1, () for B == 1.
    """
    B, D = x.shape
    H = w1.shape[0]

    if tb is None:
        tb = _auto_tb(B)
    grid = (pl.cdiv(B, tb),)                    # partial last block handled by Pallas

    w2_col = jnp.reshape(w2, (H, 1))
    b2_2d = jnp.reshape(b2, (1, 1))

    # Advisory cost hint for XLA scheduling around the custom call.
    cost = pl.CostEstimate(
        flops=2 * B * D * H + 2 * B * H,
        transcendentals=B,
        bytes_accessed=B * D * 4 + H * D * 4 + H * 4 + 4 + B * 4,
    )

    # Double-buffered x block is 2*tb*D*4 bytes (<= ~2 MiB at tb=8192, D=32):
    # comfortably under the default scoped VMEM limit on v5e/v6e/v7x, so no
    # vmem_limit_bytes override is needed.
    out = pl.pallas_call(
        mlp_kernel,
        out_shape=jax.ShapeDtypeStruct((1, B), jnp.float32),
        grid=grid,
        in_specs=[
            # Streamed activation tile in natural layout; default 2-deep
            # buffering (bump via pipeline_mode=pl.Buffered(3) only if v5e
            # profiling still shows exposed DMA after enlarging tb).
            pl.BlockSpec((tb, D), lambda i: (i, 0)),
            pl.BlockSpec((H, D), lambda i: (0, 0)),          # w1 resident
            pl.BlockSpec((H, 1), lambda i: (0, 0)),          # w2 resident
            pl.BlockSpec(memory_space=pltpu.MemorySpace.SMEM),  # b2 scalar
        ],
        out_specs=pl.BlockSpec((1, tb), lambda i: (0, i)),   # lane-dense output
        compiler_params=pltpu.CompilerParams(
            dimension_semantics=("parallel",),               # megacore on v7x
        ),
        cost_estimate=cost,
    )(x, w1, w2_col, b2_2d)

    # torch.squeeze removes all size-1 dims (also drops the batch dim when B==1).
    return jnp.squeeze(out[0, :])


if __name__ == "__main__":
    key = jax.random.PRNGKey(0)
    k_x, k_w1, k_w2, k_b2 = jax.random.split(key, 4)

    batch = 4096               # auto tb=512 -> 8 grid steps (>=4/core on v7x)
    input_size = 32            # D
    hidden = input_size // 2   # H = D/2 per the module definition

    # Deterministic synthetic params in PyTorch nn.Linear layout.
    x = jax.random.normal(k_x, (batch, input_size), dtype=jnp.float32)
    w1 = jax.random.normal(k_w1, (hidden, input_size), dtype=jnp.float32) * 0.1
    w2 = jax.random.normal(k_w2, (1, hidden), dtype=jnp.float32) * 0.1
    b2 = jax.random.normal(k_b2, (1,), dtype=jnp.float32) * 0.1

    y = mlp_forward(x, w1, w2, b2)
    jax.block_until_ready(y)

    # Plain-JAX reference of the PyTorch forward.
    ref = jax.nn.sigmoid(jnp.maximum(x @ w1.T, 0.0) @ w2.T + b2).squeeze()
    assert y.shape == (batch,), y.shape
    assert jnp.allclose(y, ref, atol=1e-5, rtol=1e-5), float(jnp.max(jnp.abs(y - ref)))

    print("KERNEL_OK")
</pallas_src>

<mosaic_0001>
module attributes {stable_mosaic.version = 11 : i64} {
  func.func @mlp_kernel(%arg0: i32, %arg1: memref<512x32xf32, #tpu.memory_space<vmem>>, %arg2: memref<16x32xf32, #tpu.memory_space<vmem>>, %arg3: memref<16x1xf32, #tpu.memory_space<vmem>>, %arg4: memref<1x1xf32, #tpu.memory_space<smem>>, %arg5: memref<1x512xf32, #tpu.memory_space<vmem>>) attributes {dimension_semantics = [#tpu.dimension_semantics<parallel>], iteration_bounds = array<i64: 8>, scalar_prefetch = 0 : i64, scratch_operands = 0 : i64, tpu.core_type = #tpu.core_type<tc>, window_params = [{transform_indices = @transform_0, window_bounds = array<i64: 512, 32>}, {pipeline_mode = #tpu.pipeline_mode<synchronous>, transform_indices = @transform_1, window_bounds = array<i64: 16, 32>}, {pipeline_mode = #tpu.pipeline_mode<synchronous>, transform_indices = @transform_2, window_bounds = array<i64: 16, 1>}, {transform_indices = @transform_3, window_bounds = array<i64: 1, 1>}, {transform_indices = @transform_4, window_bounds = array<i64: 1, 512>}]} {
    %c0 = arith.constant 0 : index
    %c0_0 = arith.constant 0 : index
    %0 = vector.load %arg2[%c0, %c0_0] : memref<16x32xf32, #tpu.memory_space<vmem>>, vector<16x32xf32>
    %c0_1 = arith.constant 0 : index
    %c0_2 = arith.constant 0 : index
    %1 = vector.load %arg1[%c0_1, %c0_2] : memref<512x32xf32, #tpu.memory_space<vmem>>, vector<512x32xf32>
    %cst = arith.constant dense<0.000000e+00> : vector<16x512xf32>
    %2 = tpu.matmul %0, %1, %cst {dimension_numbers = #tpu.dot_dimension_numbers<[1], [1], [0], [0], [0, 0, 1, 0], [], []>} : vector<16x32xf32>, vector<512x32xf32>, vector<16x512xf32> -> vector<16x512xf32>
    %cst_3 = arith.constant 0.000000e+00 : f32
    %3 = vector.broadcast %cst_3 : f32 to vector<16x512xf32>
    %4 = arith.maximumf %2, %3 : vector<16x512xf32>
    %c0_4 = arith.constant 0 : index
    %c0_5 = arith.constant 0 : index
    %5 = vector.load %arg3[%c0_4, %c0_5] : memref<16x1xf32, #tpu.memory_space<vmem>>, vector<16x1xf32>
    %6 = vector.broadcast %5 : vector<16x1xf32> to vector<16x512xf32>
    %7 = arith.mulf %4, %6 : vector<16x512xf32>
    %cst_6 = arith.constant dense<0.000000e+00> : vector<512xf32>
    %8 = vector.multi_reduction <add>, %7, %cst_6 [0] : vector<16x512xf32> to vector<512xf32>
    %9 = vector.shape_cast %8 : vector<512xf32> to vector<1x512xf32>
    %c0_7 = arith.constant 0 : index
    %c0_8 = arith.constant 0 : index
    %10 = memref.load %arg4[%c0_7, %c0_8] : memref<1x1xf32, #tpu.memory_space<smem>>
    %11 = vector.broadcast %10 : f32 to vector<1x512xf32>
    %12 = arith.addf %9, %11 : vector<1x512xf32>
    %cst_9 = arith.constant 0.000000e+00 : f32
    %13 = vector.broadcast %cst_9 : f32 to vector<1x512xf32>
    %14 = arith.subf %13, %12 : vector<1x512xf32>
    %15 = math.exp %14 : vector<1x512xf32>
    %cst_10 = arith.constant 1.000000e+00 : f32
    %16 = vector.broadcast %cst_10 : f32 to vector<1x512xf32>
    %17 = arith.addf %16, %15 : vector<1x512xf32>
    %cst_11 = arith.constant 1.000000e+00 : f32
    %18 = vector.broadcast %cst_11 : f32 to vector<1x512xf32>
    %19 = arith.divf %18, %17 : vector<1x512xf32>
    %c0_12 = arith.constant 0 : index
    %c0_13 = arith.constant 0 : index
    %20 = vector.load %arg5[%c0_12, %c0_13] : memref<1x512xf32, #tpu.memory_space<vmem>>, vector<1x512xf32>
    tpu.vector_store %arg5[%c0_12, %c0_13], %19 {strides = array<i32>} : memref<1x512xf32, #tpu.memory_space<vmem>>, vector<1x512xf32>,
    return
  }
  func.func @transform_0(%arg0: i32) -> (i32, i32) {
    %c0_i32 = arith.constant 0 : i32
    %c0_i32_0 = arith.constant 0 : i32
    return %arg0, %c0_i32 : i32, i32
  }
  func.func @transform_1(%arg0: i32) -> (i32, i32) {
    %c0_i32 = arith.constant 0 : i32
    %c0_i32_0 = arith.constant 0 : i32
    %c0_i32_1 = arith.constant 0 : i32
    return %c0_i32, %c0_i32_0 : i32, i32
  }
  func.func @transform_2(%arg0: i32) -> (i32, i32) {
    %c0_i32 = arith.constant 0 : i32
    %c0_i32_0 = arith.constant 0 : i32
    %c0_i32_1 = arith.constant 0 : i32
    return %c0_i32, %c0_i32_0 : i32, i32
  }
  func.func @transform_3(%arg0: i32) -> (i32, i32) {
    %c0_i32 = arith.constant 0 : i32
    %c0_i32_0 = arith.constant 0 : i32
    %c0_i32_1 = arith.constant 0 : i32
    return %c0_i32, %c0_i32_0 : i32, i32
  }
  func.func @transform_4(%arg0: i32) -> (i32, i32) {
    %c0_i32 = arith.constant 0 : i32
    %c0_i32_0 = arith.constant 0 : i32
    return %c0_i32, %arg0 : i32, i32
  }
}

</mosaic_0001>

<bundles_post_ra>
// kernel: mlp_forward.1
= control target key start
LH: loop header
LB: loop body
LE: loop exit
PB: predicated region body
PF: predicated region fallthrough
CT: control target
= control target key end

     0   :  { %s1476_s0 = inlined_call_operand.vmem [shape: f32[4096,32], index: 0, kind: input, shape index: {}]   ;;  %s1477_s1 = inlined_call_operand.vmem [shape: f32[16,32], index: 1, kind: input, shape index: {}]   ;;  %s1478_s2 = inlined_call_operand.vmem [shape: f32[16,1], index: 2, kind: input, shape index: {}]   ;;  %s1479_s3 = inlined_call_operand.<no memory space> [shape: f32[1,1], index: 3, kind: input, shape index: {}]   ;;  %s1480_s4 = inlined_call_operand.hbm [shape: f32[1,4096], index: 4, kind: output, shape index: {}]  }
   0x1   :  { %9 = sst [smem:[#allocation2]] %s1479_s3 }
   0x2   :  { %10 = vsyncpa [#allocation4], 0 }
   0x3   :  { %12 = vsyncpa [#allocation4 + $0x1], 0  ;;  %s1215_s17 = smov 0   ;;  %s1217_s18 = smov 0  }
   0x4   :  { %s1219_s19 = smov 0   ;;  %s1221_s20 = smov 0  }
   0x5 LB: > { %s812_s3 = sadd.s32 4294967295, %s1182_s20   ;;  %s813_s21 = sadd.s32 4294967294, %s1182_s20   ;;  %s1182_s20 = sphi %s1221_s20, %s1488_s20   ;;  %s1178_s19 = sphi %s1219_s19, %s1487_s19   ;;  %s1174_s18 = sphi %s1217_s18, %s1486_s18   ;;  %s1170_s17 = sphi %s1215_s17, %s1485_s17  }
   0x6   : > { %s1238_s22 = sadd.s32 1, %s1182_s20   ;;  %s114_s23 = sadd.s32 1, %s1178_s19 }
   0x7   : > { %s111_s24 = ssub.s32 %s1182_s20, %s1238_s22  ;;  %p124_p0 = scmp.ne.s32.totalorder %s1178_s19, %s1174_s18 }
   0x8   : > { %p112_p1 = scmp.eq.s32.totalorder %s111_s24, 0  ;;  %p125_p2 = scmp.eq.s32.totalorder %s812_s3, 7 }
   0x9   : > { %p130_p3 = scmp.ne.s32.totalorder %s1174_s18, %s1170_s17  ;;  %p131_p4 = scmp.eq.s32.totalorder %s813_s21, 7 }
   0xa   : > { %s1248_s25 = scalar_select %p112_p1, %s1178_s19, %s114_s23  }
   0xb   : > { %p1250_p5 = por %p125_p2, %p124_p0  ;;  %p1254_p6 = por %p131_p4, %p130_p3 }
   0xc   : > { %p816_p7 = scmp.ge.s32.totalorder %s1182_s20, 1  ;;  %p167_p8 = scmp.lt.s32.totalorder %s1182_s20, 9 }
   0xe   : > { %p168_p9 = pnand %p816_p7, %p167_p8 }
   0xf   : > { %s1260_s28 = sshll.u32 (!%p168_p9), %s812_s3, 6  ;;  %vm266_vm0 = vcmask (!%p168_p9), 261120   ;;  %v1265_v0 = vld [vmem:[%s1477_s1] sm:$0xff] (!%p168_p9)  ;;  %v1184_v2 = vmov (!%p168_p9), 0   ;;  %v628_v3 = vld [vmem:[%s1478_s2 + $0x8] sm:$0xff] (!%p168_p9)  ;;  %s675_s16 = sld [smem:[#allocation2]] (!%p168_p9) }
  0x10   : > { %171 = sbr.rel (%p168_p9) target bundleno = 384 (0x180), region = 36  ;;  %v627_v1 = vld [vmem:[%s1478_s2] sm:$0xff] (!%p168_p9)  ;;  %p194_p10 = scmp.lt.s32.totalorder (!%p168_p9), %s1260_s28, 511  ;;  %926 = vmatprep.mubr.msk.f32.mxu0 (!%p168_p9), %vm266_vm0, %v1265_v0  ;;  %962 = vmatprep.mubr.msk.f32.mxu1 (!%p168_p9), %vm266_vm0, %v1265_v0  ;;  %vm1286_vm1 = vmpackc.low (!%p168_p9), %vm266_vm0, %vm266_vm0 }
  0x11   : > { %1103 = vset.pattern.permute.xlu0 (!%p168_p9), %v1184_v2  ;;  %s190_s3 = sand.u32 (!%p168_p9), 1, %s1174_s18   ;;  %s1434_s5 = scalar_lea.hbm (!%p168_p9), %s1480_s4, %s1260_s28 }
  0x12   : > { %631 = vperm.xlu0 (!%p168_p9), %1103, %v627_v1   ;;  %s817_s21 = sshll.u32 (!%p168_p9), %s190_s3, 2  ;;  %s740_s6 = scalar_lea.sflag (!%p168_p9), [#allocation4], %s190_s3 }
  0x13   : > { %s192_s23 = scalar_lea.vmem (!%p168_p9), [#allocation3], %s817_s21  ;;  %s1186_s8 = smov (!%p168_p9), [#allocation3]  }
  0x14   : > { %s754_s24 = sshll.u32 (!%p168_p9), %s192_s23, 4  ;;  %s1124_s9 = sshll.u32 (!%p168_p9), %s1186_s8, 4  ;;  %s1436_s24 = int_to_ptr.vmem [resolvable:$true] %s754_s24  ;;  %s1125_s9 = int_to_ptr.vmem [resolvable:$false] %s1124_s9 }
  0x15   : > { %p1127_p0 = scmp.lt.s32.totalorder (!%p168_p9), %s1436_s24, %s1125_s9 }
  0x16   : > { %636 = vperm.xlu0 (!%p168_p9), %1103, %v628_v3  }
  0x17   : > { %s195_s7 = scalar_select %p194_p10, %s1260_s28, 511 }
  0x19   : > { %s819_s10 = sshll.u32 %s195_s7, 3  ;;  %s1120_s7 = scalar_lea.vmem %s1436_s24, 64 }
  0x1a   : > { %s1282_s13 = scalar_lea.vmem %s1476_s0, %s819_s10  ;;  %p1121_p11 = scmp.ne.s32.totalorder %s1436_s24, %s1120_s7 }
  0x1b   : > { %v218_v5 = vld [vmem:[%s1282_s13 + $0x80] sm:$0xff]  ;;  %v219_v6 = vld [vmem:[%s1282_s13 + $0x88] sm:$0xff]  ;;  %v220_v16 = vld [vmem:[%s1282_s13 + $0x90] sm:$0xff]  ;;  %s1126_s10 = scalar_lea.vmem %s1125_s9, 128 }
  0x1c   : > { %v250_v7 = vld [vmem:[%s1282_s13 + $0x180] sm:$0xff]  ;;  %v966_v8 = vpack.c.bf16 %v219_v6, %v218_v5  ;;  %v251_v9 = vld [vmem:[%s1282_s13 + $0x188] sm:$0xff]  ;;  %v221_v18 = vld [vmem:[%s1282_s13 + $0x98] sm:$0xff]  ;;  %p1122_p12 = pnand %p1121_p11, %p1250_p5  ;;  %p1128_p1 = scmp.lt.s32.totalorder %s1126_s10, %s1120_s7 }
  0x1d   : > { %v202_v10 = vld [vmem:[%s1282_s13] sm:$0xff]  ;;  %v203_v11 = vld [vmem:[%s1282_s13 + $0x8] sm:$0xff]  ;;  %v1014_v12 = vpack.c.bf16 %v251_v9, %v250_v7  ;;  %v252_v19 = vld [vmem:[%s1282_s13 + $0x190] sm:$0xff]  ;;  %v972_v21 = vpack.c.bf16 %v221_v18, %v220_v16 }
  0x1e   : > { %v969_v13 = vpack.c.bf16 %v203_v11, %v202_v10  ;;  %v234_v14 = vld [vmem:[%s1282_s13 + $0x100] sm:$0xff]  ;;  %v235_v15 = vld [vmem:[%s1282_s13 + $0x108] sm:$0xff]  ;;  %968 = vmatprep.subr.msk.bf16.mxu0 %vm1286_vm1, %v966_v8  ;;  %v253_v20 = vld [vmem:[%s1282_s13 + $0x198] sm:$0xff]  ;;  %p1123_p13 = pneg %p1122_p12  ;;  %p1129_p2 = por %p1128_p1, %p1127_p0 }
  0x1f   : > { %v1017_v17 = vpack.c.bf16 %v235_v15, %v234_v14  ;;  %1016 = vmatprep.subr.msk.bf16.mxu1 %vm1286_vm1, %v1014_v12  ;;  %v1020_v22 = vpack.c.bf16 %v253_v20, %v252_v19  ;;  %v204_v23 = vld [vmem:[%s1282_s13 + $0x10] sm:$0xff]  ;;  %v205_v24 = vld [vmem:[%s1282_s13 + $0x18] sm:$0xff]  ;;  %v222_v27 = vld [vmem:[%s1282_s13 + $0xa0] sm:$0xff] }
  0x20   : > { %971 = vmatpush3.bf16.xpose.msk.msra.mxu0 %vm1286_vm1, %v969_v13  ;;  %v236_v25 = vld [vmem:[%s1282_s13 + $0x110] sm:$0xff]  ;;  %v237_v26 = vld [vmem:[%s1282_s13 + $0x118] sm:$0xff]  ;;  %v223_v28 = vld [vmem:[%s1282_s13 + $0xa8] sm:$0xff]  ;;  %v975_v31 = vpack.c.bf16 %v205_v24, %v204_v23  ;;  %p1130_p3 = pnand %p1129_p2, %p1123_p13 }
  0x21   : > { %1019 = vmatpush3.bf16.xpose.msk.msra.mxu1 %vm1286_vm1, %v1017_v17  ;;  %974 = vmatprep.subr.msk.bf16.mxu0 %vm1286_vm1, %v972_v21  ;;  %v254_v29 = vld [vmem:[%s1282_s13 + $0x1a0] sm:$0xff]  ;;  %v255_v30 = vld [vmem:[%s1282_s13 + $0x1a8] sm:$0xff]  ;;  %v1023_v32 = vpack.c.bf16 %v237_v26, %v236_v25  ;;  %v978_v33 = vpack.c.bf16 %v223_v28, %v222_v27  ;;  %v224_v39 = vld [vmem:[%s1282_s13 + $0xb0] sm:$0xff] }
  0x22   : > { %1022 = vmatprep.subr.msk.bf16.mxu1 %vm1286_vm1, %v1020_v22  ;;  %v1026_v34 = vpack.c.bf16 %v255_v30, %v254_v29  ;;  %v206_v35 = vld [vmem:[%s1282_s13 + $0x20] sm:$0xff]  ;;  %v207_v36 = vld [vmem:[%s1282_s13 + $0x28] sm:$0xff]  ;;  %v225_v40 = vld [vmem:[%s1282_s13 + $0xb8] sm:$0xff] }
  0x23   : > { %v238_v37 = vld [vmem:[%s1282_s13 + $0x120] sm:$0xff]  ;;  %v239_v38 = vld [vmem:[%s1282_s13 + $0x128] sm:$0xff]  ;;  %v256_v41 = vld [vmem:[%s1282_s13 + $0x1b0] sm:$0xff]  ;;  %v981_v43 = vpack.c.bf16 %v207_v36, %v206_v35  ;;  %v984_v45 = vpack.c.bf16 %v225_v40, %v224_v39 }
  0x24   : > { %v257_v42 = vld [vmem:[%s1282_s13 + $0x1b8] sm:$0xff]  ;;  %v1029_v44 = vpack.c.bf16 %v239_v38, %v238_v37  ;;  %v208_v47 = vld [vmem:[%s1282_s13 + $0x30] sm:$0xff]  ;;  %v226_v51 = vld [vmem:[%s1282_s13 + $0xc0] sm:$0xff] }
  0x25   : > { %v1032_v46 = vpack.c.bf16 %v257_v42, %v256_v41  ;;  %v209_v48 = vld [vmem:[%s1282_s13 + $0x38] sm:$0xff]  ;;  %v240_v49 = vld [vmem:[%s1282_s13 + $0x130] sm:$0xff]  ;;  %v227_v52 = vld [vmem:[%s1282_s13 + $0xc8] sm:$0xff] }
  0x26   : > { %v241_v50 = vld [vmem:[%s1282_s13 + $0x138] sm:$0xff]  ;;  %v258_v53 = vld [vmem:[%s1282_s13 + $0x1c0] sm:$0xff]  ;;  %v259_v54 = vld [vmem:[%s1282_s13 + $0x1c8] sm:$0xff]  ;;  %v987_v55 = vpack.c.bf16 %v209_v48, %v208_v47  ;;  %v990_v57 = vpack.c.bf16 %v227_v52, %v226_v51 }
  0x27   : > { %v1035_v56 = vpack.c.bf16 %v241_v50, %v240_v49  ;;  %v1038_v58 = vpack.c.bf16 %v259_v54, %v258_v53  ;;  %v210_v59 = vld [vmem:[%s1282_s13 + $0x40] sm:$0xff]  ;;  %v211_v60 = vld [vmem:[%s1282_s13 + $0x48] sm:$0xff]  ;;  %v228_v63 = vld [vmem:[%s1282_s13 + $0xd0] sm:$0xff] }
  0x28   : > { %977 = vmatpush3.bf16.xpose.msk.msra.mxu0 %vm1286_vm1, %v975_v31  ;;  %v242_v61 = vld [vmem:[%s1282_s13 + $0x140] sm:$0xff]  ;;  %v243_v62 = vld [vmem:[%s1282_s13 + $0x148] sm:$0xff]  ;;  %v229_v1 = vld [vmem:[%s1282_s13 + $0xd8] sm:$0xff]  ;;  %v993_v5 = vpack.c.bf16 %v211_v60, %v210_v59 }
  0x29   : > { %1025 = vmatpush3.bf16.xpose.msk.msra.mxu1 %vm1286_vm1, %v1023_v32  ;;  %980 = vmatprep.subr.msk.bf16.mxu0 %vm1286_vm1, %v978_v33  ;;  %v260_v2 = vld [vmem:[%s1282_s13 + $0x1d0] sm:$0xff]  ;;  %v261_v3 = vld [vmem:[%s1282_s13 + $0x1d8] sm:$0xff]  ;;  %v1041_v6 = vpack.c.bf16 %v243_v62, %v242_v61  ;;  %v996_v7 = vpack.c.bf16 %v229_v1, %v228_v63  ;;  %v230_v13 = vld [vmem:[%s1282_s13 + $0xe0] sm:$0xff] }
  0x2a   : > { %1028 = vmatprep.subr.msk.bf16.mxu1 %vm1286_vm1, %v1026_v34  ;;  %v1044_v8 = vpack.c.bf16 %v261_v3, %v260_v2  ;;  %v212_v9 = vld [vmem:[%s1282_s13 + $0x50] sm:$0xff]  ;;  %v213_v10 = vld [vmem:[%s1282_s13 + $0x58] sm:$0xff]  ;;  %v231_v14 = vld [vmem:[%s1282_s13 + $0xe8] sm:$0xff] }
  0x2b   : > { %v244_v11 = vld [vmem:[%s1282_s13 + $0x150] sm:$0xff]  ;;  %v245_v12 = vld [vmem:[%s1282_s13 + $0x158] sm:$0xff]  ;;  %v262_v15 = vld [vmem:[%s1282_s13 + $0x1e0] sm:$0xff]  ;;  %v999_v17 = vpack.c.bf16 %v213_v10, %v212_v9  ;;  %v1002_v19 = vpack.c.bf16 %v231_v14, %v230_v13 }
  0x2c   : > { %v263_v16 = vld [vmem:[%s1282_s13 + $0x1e8] sm:$0xff]  ;;  %v1047_v18 = vpack.c.bf16 %v245_v12, %v244_v11  ;;  %v214_v21 = vld [vmem:[%s1282_s13 + $0x60] sm:$0xff]  ;;  %v232_v25 = vld [vmem:[%s1282_s13 + $0xf0] sm:$0xff] }
  0x2d   : > { %v1050_v20 = vpack.c.bf16 %v263_v16, %v262_v15  ;;  %v215_v22 = vld [vmem:[%s1282_s13 + $0x68] sm:$0xff]  ;;  %v246_v23 = vld [vmem:[%s1282_s13 + $0x160] sm:$0xff]  ;;  %v233_v26 = vld [vmem:[%s1282_s13 + $0xf8] sm:$0xff] }
  0x2e   : > { %v247_v24 = vld [vmem:[%s1282_s13 + $0x168] sm:$0xff]  ;;  %v264_v27 = vld [vmem:[%s1282_s13 + $0x1f0] sm:$0xff]  ;;  %v265_v28 = vld [vmem:[%s1282_s13 + $0x1f8] sm:$0xff]  ;;  %v1005_v29 = vpack.c.bf16 %v215_v22, %v214_v21  ;;  %v1008_v31 = vpack.c.bf16 %v233_v26, %v232_v25 }
  0x2f   : > { %v1053_v30 = vpack.c.bf16 %v247_v24, %v246_v23  ;;  %v1056_v32 = vpack.c.bf16 %v265_v28, %v264_v27  ;;  %v216_v33 = vld [vmem:[%s1282_s13 + $0x70] sm:$0xff]  ;;  %v217_v34 = vld [vmem:[%s1282_s13 + $0x78] sm:$0xff]  ;;  %v201_v39 = vld [vmem:[%s1477_s1 + $0x8] sm:$0xff]  ;;  %v676_v23 = vstv %s675_s16 }
  0x30   : > { %983 = vmatpush3.bf16.xpose.msk.msra.mxu0 %vm1286_vm1, %v981_v43  ;;  %v248_v35 = vld [vmem:[%s1282_s13 + $0x170] sm:$0xff]  ;;  %v249_v36 = vld [vmem:[%s1282_s13 + $0x178] sm:$0xff]  ;;  %v1011_v37 = vpack.c.bf16 %v217_v34, %v216_v33 }
  0x31   : > { %1031 = vmatpush3.bf16.xpose.msk.msra.mxu1 %vm1286_vm1, %v1029_v44  ;;  %986 = vmatprep.subr.msk.bf16.mxu0 %vm1286_vm1, %v984_v45  ;;  %v1059_v38 = vpack.c.bf16 %v249_v36, %v248_v35 }
  0x32   : > { %1034 = vmatprep.subr.msk.bf16.mxu1 %vm1286_vm1, %v1032_v46 }
  0x38   : > { %989 = vmatpush3.bf16.xpose.msk.msra.mxu0 %vm1286_vm1, %v987_v55 }
  0x39   : > { %1037 = vmatpush3.bf16.xpose.msk.msra.mxu1 %vm1286_vm1, %v1035_v56  ;;  %992 = vmatprep.subr.msk.bf16.mxu0 %vm1286_vm1, %v990_v57 }
  0x3a   : > { %1040 = vmatprep.subr.msk.bf16.mxu1 %vm1286_vm1, %v1038_v58 }
  0x40   : > { %995 = vmatpush3.bf16.xpose.msk.msra.mxu0 %vm1286_vm1, %v993_v5 }
  0x41   : > { %1043 = vmatpush3.bf16.xpose.msk.msra.mxu1 %vm1286_vm1, %v1041_v6  ;;  %998 = vmatprep.subr.msk.bf16.mxu0 %vm1286_vm1, %v996_v7 }
  0x42   : > { %1046 = vmatprep.subr.msk.bf16.mxu1 %vm1286_vm1, %v1044_v8 }
  0x48   : > { %1001 = vmatpush3.bf16.xpose.msk.msra.mxu0 %vm1286_vm1, %v999_v17 }
  0x49   : > { %1049 = vmatpush3.bf16.xpose.msk.msra.mxu1 %vm1286_vm1, %v1047_v18  ;;  %1004 = vmatprep.subr.msk.bf16.mxu0 %vm1286_vm1, %v1002_v19 }
  0x4a   : > { %1052 = vmatprep.subr.msk.bf16.mxu1 %vm1286_vm1, %v1050_v20 }
  0x50   : > { %1007 = vmatpush3.bf16.xpose.msk.msra.mxu0 %vm1286_vm1, %v1005_v29 }
  0x51   : > { %1055 = vmatpush3.bf16.xpose.msk.msra.mxu1 %vm1286_vm1, %v1053_v30  ;;  %1010 = vmatprep.subr.msk.bf16.mxu0 %vm1286_vm1, %v1008_v31 }
  0x52   : > { %1058 = vmatprep.subr.msk.bf16.mxu1 %vm1286_vm1, %v1056_v32 }
  0x58   : > { %1013 = vmatpush3.bf16.xpose.msk.msra.mxu0 %vm1286_vm1, %v1011_v37 }
  0x59   : > { %1061 = vmatpush3.bf16.xpose.msk.msra.mxu1 %vm1286_vm1, %v1059_v38 }
  0x5f   : > { %927 = vmatmul.mubr.msk.f32.vlgmr.msra.gmra.mrb[0].mxu0 %vm266_vm0, %v1265_v0 }
  0x60   : > { %963 = vmatmul.mubr.msk.f32.vlgmr.msra.gmra.mrb[0].mxu1 %vm266_vm0, %v1265_v0  ;;  %928 = vmatprep.mubr.msk.f32.mxu0 %vm266_vm0, %v201_v39 }
  0x61   : > { %964 = vmatprep.mubr.msk.f32.mxu1 %vm266_vm0, %v201_v39 }
  0x63   : > { %929 = vmatmul.mubr.msk.f32.gmra.mrb[2].mxu0 %vm266_vm0, %v201_v39 }
  0x64   : > { %965 = vmatmul.mubr.msk.f32.gmra.mrb[2].mxu1 %vm266_vm0, %v201_v39 }
  0x91   : > { %v632_v4 = vpop.permute.xlu0 %631 }
  0x95   : > { %v637_v51 = vpop.permute.xlu0 %636 }
 0x132   : > { %v531_v40 = vpop.f32.mrb[0].mxu0 }
 0x133   : > { %v608_v41 = vpop.f32.mrb[0].mxu1  ;;  %v533_v42 = vpop.f32.mrb[1].mxu0  ;;  %v619_v44 = vmax.f32 %v531_v40, 0.0 }
 0x134   : > { %v610_v43 = vpop.f32.mrb[1].mxu1  ;;  %v621_v45 = vmax.f32 %v608_v41, 0.0  ;;  %v620_v46 = vmax.f32 %v533_v42, 0.0 }
 0x135   : > { %v622_v48 = vmax.f32 %v610_v43, 0.0  ;;  %v639_v55 = vmul.f32 %v632_v4, %v619_v44 }
 0x136   : > { %v537_v47 = vpop.f32.mrb[2].mxu0  ;;  %v641_v58 = vmul.f32 %v632_v4, %v621_v45  ;;  %v640_v59 = vmul.f32 %v632_v4, %v620_v46 }
 0x137   : > { %v623_v49 = vmax.f32 %v537_v47, 0.0  ;;  %v614_v0 = vpop.f32.mrb[2].mxu1  ;;  %v539_v50 = vpop.f32.mrb[3].mxu0  ;;  %v642_v62 = vmul.f32 %v632_v4, %v622_v48 }
 0x138   : > { %v625_v52 = vmax.f32 %v614_v0, 0.0  ;;  %v624_v53 = vmax.f32 %v539_v50, 0.0  ;;  %v616_v54 = vpop.f32.mrb[3].mxu1  ;;  %v1185_v0 = vmov 1966171168  }
 0x139   : > { %v643_v56 = vmul.f32 %v637_v51, %v623_v49  ;;  %v626_v57 = vmax.f32 %v616_v54, 0.0  ;;  %v712_v50 = vunpack.c.l.s4 %v1185_v0 }
 0x13a   : > { %v645_v60 = vmul.f32 %v637_v51, %v625_v52  ;;  %v644_v61 = vmul.f32 %v637_v51, %v624_v53 }
 0x13b   : > { %v647_v63 = vadd.f32 %v643_v56, %v639_v55  ;;  %v646_v1 = vmul.f32 %v637_v51, %v626_v57  ;;  %v714_v51 = vlaneseq  ;;  %v713_v52 = vunpack.c.0.s8 %v712_v50 }
 0x13c   : > { %v661_v2 = vadd.f32 %v645_v60, %v641_v58  ;;  %v654_v3 = vadd.f32 %v644_v61, %v640_v59 }
 0x13d   : > { %v648_v5 = vrot.slane %v647_v63, 4  ;;  %v668_v6 = vadd.f32 %v646_v1, %v642_v62  ;;  %v715_v53 = vshrl.u32 %v714_v51, 7  ;;  %vm736_vm2 = vcmp.lt.s32.totalorder %v714_v51, 512 }
 0x13e   : > { %v662_v7 = vrot.slane %v661_v2, 4  ;;  %v655_v8 = vrot.slane %v654_v3, 4 }
 0x13f   : > { %v649_v9 = vadd.f32 %v648_v5, %v647_v63  ;;  %v669_v10 = vrot.slane %v668_v6, 4  ;;  %v716_v56 = vsub.s32 %v713_v52, %v715_v53 }
 0x140   : > { %v663_v11 = vadd.f32 %v662_v7, %v661_v2  ;;  %v656_v12 = vadd.f32 %v655_v8, %v654_v3 }
 0x141   : > { %v650_v13 = vrot.slane %v649_v9, 2  ;;  %v670_v14 = vadd.f32 %v669_v10, %v668_v6 }
 0x142   : > { %v664_v15 = vrot.slane %v663_v11, 2  ;;  %v657_v16 = vrot.slane %v656_v12, 2 }
 0x143   : > { %v651_v17 = vadd.f32 %v650_v13, %v649_v9  ;;  %v671_v18 = vrot.slane %v670_v14, 2 }
 0x144   : > { %v665_v19 = vadd.f32 %v664_v15, %v663_v11  ;;  %v658_v20 = vadd.f32 %v657_v16, %v656_v12 }
 0x145   : > { %v652_v21 = vrot.slane %v651_v17, 1  ;;  %v672_v22 = vadd.f32 %v671_v18, %v670_v14 }
 0x146   : > { %v666_v24 = vrot.slane %v665_v19, 1  ;;  %v659_v25 = vrot.slane %v658_v20, 1 }
 0x147   : > { %v653_v26 = vadd.f32 %v652_v21, %v651_v17  ;;  %v673_v27 = vrot.slane %v672_v22, 1 }
 0x148   : > { %v667_v28 = vadd.f32 %v666_v24, %v665_v19  ;;  %v660_v29 = vadd.f32 %v659_v25, %v658_v20 }
 0x149   : > { %v677_v30 = vadd.f32 %v676_v23, %v653_v26  ;;  %v674_v31 = vadd.f32 %v673_v27, %v672_v22 }
 0x14a   : > { %v679_v32 = vadd.f32 %v676_v23, %v667_v28  ;;  %v678_v33 = vadd.f32 %v676_v23, %v660_v29 }
 0x14b   : > { %v681_v34 = vsub.f32 0.0, %v677_v30  ;;  %v680_v35 = vadd.f32 %v676_v23, %v674_v31 }
 0x14c   : > { %v683_v36 = vsub.f32 0.0, %v679_v32  ;;  %v682_v37 = vsub.f32 0.0, %v678_v33 }
 0x14d   : > { %v685_v38 = vmul.f32 1.442695, %v681_v34  ;;  %v684_v39 = vsub.f32 0.0, %v680_v35 }
 0x14e   : > { %v689_v4 = vmul.f32 1.442695, %v683_v36  ;;  %v687_v40 = vmul.f32 1.442695, %v682_v37 }
 0x14f   : > { %1104 = vpow2.f32 %v685_v38  ;;  %v691_v41 = vmul.f32 1.442695, %v684_v39 }
 0x150   : > { %1106 = vpow2.f32 %v689_v4 }
 0x151   : > { %1108 = vpow2.f32 %v687_v40 }
 0x152   : > { %1110 = vpow2.f32 %v691_v41 }
 0x159   : > { %v1105_v42 = vpop.eup %1104 }
 0x15a   : > { %v1107_v43 = vpop.eup %1106  ;;  %v693_v44 = vadd.f32 1.0, %v1105_v42 }
 0x15b   : > { %v1109_v45 = vpop.eup %1108  ;;  %v695_v46 = vadd.f32 1.0, %v1107_v43 }
 0x15c   : > { %v1111_v47 = vpop.eup %1110  ;;  %1112 = vrcp.f32 %v693_v44  ;;  %v694_v48 = vadd.f32 1.0, %v1109_v45 }
 0x15d   : > { %1114 = vrcp.f32 %v695_v46  ;;  %v696_v49 = vadd.f32 1.0, %v1111_v47 }
 0x15e   : > { %1116 = vrcp.f32 %v694_v48 }
 0x15f   : > { %1118 = vrcp.f32 %v696_v49 }
 0x166   : > { %v1113_v54 = vpop.eup %1112 }
 0x167   : > { %v1115_v55 = vpop.eup %1114 }
 0x168   : > { %v1117_v57 = vpop.eup %1116 }
 0x169   : > { %v1119_v58 = vpop.eup %1118  ;;  %v709_v59 = vcombine.low %v1113_v54, %v1117_v57 }
 0x16a   : > { %v710_v60 = vcombine.low %v1115_v55, %v1119_v58 }
 0x16b   : > { %v717_v61 = vrot.slane %v709_v59, %v716_v56 }
 0x16c   : > { %v724_v62 = vrot.slane %v710_v60, %v716_v56 }
 0x16e   : > { %v725_v63 = vcombine.low %v717_v61, %v724_v62 }
 0x170   : > { %v732_v1 = vrot.slane %v725_v63, %v716_v56 }
 0x172   : > { %738 = vst.msk [vmem:[%s192_s23] sm:$0xf] %vm736_vm2, %v732_v1 }
 0x173   : > { %1133 = shalt.err (!%p1130_p3)
}
 0x174   : > { %s1134_s28 = scalar_lea.hbm %s1434_s5, 64  ;;  %s1138_s13 = scalar_lea.hbm %s1480_s4, 512 }
 0x175   : > { %p1135_p4 = scmp.ne.s32.totalorder %s1434_s5, %s1134_s28  ;;  %p1139_p9 = scmp.lt.u32.totalorder %s1434_s5, %s1480_s4 }
 0x176   : > { %p1140_p10 = scmp.lt.u32.totalorder %s1138_s13, %s1134_s28  ;;  %p1142_p12 = scmp.lt.u32.totalorder %s1134_s28, %s1434_s5 }
 0x177   : > { %p1136_p7 = pnand %p1135_p4, %p1250_p5 }
 0x178   : > { %p1141_p11 = por %p1140_p10, %p1139_p9 }
 0x179   : > { %p1137_p8 = pneg %p1136_p7 }
 0x17a   : > { %p1143_p13 = por %p1142_p12, %p1141_p11 }
 0x17c   : > { %p1144_p0 = pnand %p1143_p13, %p1137_p8 }
 0x17e   : > { %1147 = shalt.err (!%p1144_p0)
}
 0x17f   : > { %1062 = dma.vmem_to_hbm [thread:$0]  (%p1250_p5), %s1436_s24, 64, %s1434_s5, %s740_s6  }
 0x180 PF: > { %p1068_p1 = scmp.ge.s32.totalorder %s1182_s20, 2  ;;  %s766_s16 = sand.u32 1, %s1170_s17  }
 0x181   : > { %s767_s3 = scalar_lea.sflag [#allocation4], %s766_s16 }
 0x182   : > { %p1065_p2 = pnand %p1068_p1, %p1254_p6 }
 0x184   : > { %1165 = dma.done.wait (!%p1065_p2), %s767_s3, 64  }
 0x185   : > { %1167 = vsyncadd (!%p1065_p2), %s767_s3, 4294967232  ;;  %p15_p3 = scmp.ge.s32.totalorder %s1238_s22, 10   ;;  %s1485_s17 = smov %s1174_s18 }
 0x186   : > { %s1486_s18 = smov %s1178_s19  ;;  %s1487_s19 = smov %s1248_s25 }
 0x187   : > { %s1488_s20 = smov %s1238_s22  ;;  %17 = sbr.rel (!%p15_p3) target bundleno = 5 (0x5), region = 71 }
 0x18e   :  { %772 = vsyncpa [#allocation4], 1 }
 0x18f   :  { %774 = vsyncpa [#allocation4 + $0x1], 1 }

</bundles_post_ra>
